<compile_context>
chip_gen: v6e
topology: v6e:2x2x1
jax: 0.10.0
libtpu: 0.0.40
codegen_flags: <defaults>
</compile_context>

<pallas_src>
import functools

import jax
import jax.numpy as jnp
from jax.experimental import pallas as pl
from jax.experimental.pallas import tpu as pltpu

_LANES = 128
_SUBLANES = 8


def _tpu_defaults():
    """Per-generation (tile_rows, num_chunks, vmem_limit_bytes) defaults."""
    kind = ""
    try:
        kind = jax.devices()[0].device_kind.lower()
    except Exception:  # pragma: no cover - defensive
        pass
    if "v7" in kind or "7x" in kind:
        # 2 TCs/chip, ~3.2 TB/s/TC, 64 MiB physical VMEM/TC.
        return dict(tile_rows=8192, num_chunks=2, vmem_limit_bytes=48 << 20)
    if "v6" in kind:
        # 1 TC/chip, ~1.3 TB/s, 128 MiB physical VMEM.
        return dict(tile_rows=8192, num_chunks=1, vmem_limit_bytes=80 << 20)
    if "v5" in kind:
        # v5e: 1 TC/chip, ~0.8 TB/s, 128 MiB physical VMEM (16 MiB default scoped).
        return dict(tile_rows=4096, num_chunks=1, vmem_limit_bytes=48 << 20)
    # Unknown chip: conservative settings, default scoped VMEM.
    return dict(tile_rows=2048, num_chunks=1, vmem_limit_bytes=None)


def _wmse_kernel(p_ref, t_ref, w_ref, out_ref, *, valid_rows, tile_rows,
                 steps_per_chunk):
    """Accumulates sum(w * (p - t)^2) for one chunk into a (1,8,128) partial."""
    c = pl.program_id(0)   # parallel chunk axis
    i = pl.program_id(1)   # arbitrary (reduction) axis

    @pl.when(i == 0)
    def _():
        out_ref[...] = jnp.zeros_like(out_ref)

    p = p_ref[...].astype(jnp.float32)
    t = t_ref[...].astype(jnp.float32)
    w = w_ref[...].astype(jnp.float32)
    d = p - t
    prod = w * d * d                                    # (tile_rows, 128)

    # Logical (unclamped) block number and its starting row.  Row indices stay
    # well inside int32 range (valid for tensors up to ~2.7e11 elements).
    block = c * steps_per_chunk + i
    row0 = block * tile_rows

    def _accumulate(x):
        # Reduce only across vregs (pure VPU adds); accumulator stays
        # vreg-shaped so no per-step cross-lane XLU reduce is on the hot path.
        out_ref[...] += jnp.sum(
            x.reshape(tile_rows // _SUBLANES, _SUBLANES, _LANES),
            axis=0, keepdims=True)

    # Hot path: interior full blocks need no masking at all (the <=127-element
    # zero pad contributes 0 on its own).
    @pl.when(row0 + tile_rows <= valid_rows)
    def _():
        _accumulate(prod)

    # Cold path: the last (possibly partial) block of the array and clamped
    # overflow blocks of the last chunk.  Row-granularity mask zeroes garbage
    # rows of a partial boundary block and the duplicated overflow blocks.
    @pl.when(row0 + tile_rows > valid_rows)
    def _():
        rows = jax.lax.broadcasted_iota(jnp.int32, (tile_rows, _LANES), 0) + row0
        _accumulate(jnp.where(rows < valid_rows, prod, 0.0))


def _weighted_mse_pallas(pred, target, weight, *, tile_rows=2048, num_chunks=1,
                         vmem_limit_bytes=None):
    """mean(weight * (pred - target)^2) via a tiled Pallas streaming reduction."""
    n = pred.size
    if n < _SUBLANES * _LANES:
        # Too small for the (8,128)-tiled path; plain fused XLA reduction.
        d = pred.astype(jnp.float32) - target.astype(jnp.float32)
        return jnp.mean(weight.astype(jnp.float32) * d * d)

    p = pred.reshape(-1)
    t = target.reshape(-1)
    w = weight.reshape(-1)

    # Pad only up to a multiple of 128 lanes (<=127 zero elements; zeros add 0
    # to the weighted sum so no extra masking is needed for them).  For
    # 128-aligned sizes this is skipped and the reshape below is a bitcast.
    n_pad = pl.cdiv(n, _LANES) * _LANES
    pad = n_pad - n
    if pad:
        p = jnp.pad(p, (0, pad))
        t = jnp.pad(t, (0, pad))
        w = jnp.pad(w, (0, pad))

    rows = n_pad // _LANES
    p = p.reshape(rows, _LANES)
    t = t.reshape(rows, _LANES)
    w = w.reshape(rows, _LANES)

    # tile_rows: multiple of 8, no larger than the (rounded-down) row count.
    tile_rows = max(_SUBLANES, (tile_rows // _SUBLANES) * _SUBLANES)
    tile_rows = min(tile_rows, (rows // _SUBLANES) * _SUBLANES)
    blocks_total = pl.cdiv(rows, tile_rows)
    num_chunks = max(1, min(num_chunks, blocks_total))
    steps = pl.cdiv(blocks_total, num_chunks)
    max_block = blocks_total - 1

    def in_map(c, i):
        # Clamp overflow steps of the last chunk onto the last real block; the
        # in-kernel row mask zeroes their contribution.
        return (jnp.minimum(c * steps + i, max_block), 0)

    kernel = functools.partial(_wmse_kernel, valid_rows=rows,
                               tile_rows=tile_rows, steps_per_chunk=steps)

    cp_kwargs = dict(dimension_semantics=("parallel", "arbitrary"))
    if vmem_limit_bytes is not None:
        cp_kwargs["vmem_limit_bytes"] = int(vmem_limit_bytes)

    partials = pl.pallas_call(
        kernel,
        out_shape=jax.ShapeDtypeStruct((num_chunks, _SUBLANES, _LANES),
                                       jnp.float32),
        grid_spec=pltpu.PrefetchScalarGridSpec(
            num_scalar_prefetch=0,
            grid=(num_chunks, steps),
            in_specs=[
                pl.BlockSpec((tile_rows, _LANES), in_map),
                pl.BlockSpec((tile_rows, _LANES), in_map),
                pl.BlockSpec((tile_rows, _LANES), in_map),
            ],
            # Index map depends only on the chunk axis -> the (1,8,128) output
            # block stays VMEM-resident across the reduction axis and is used
            # directly as the accumulator (canonical P3 pattern).
            out_specs=pl.BlockSpec((1, _SUBLANES, _LANES),
                                   lambda c, i: (c, 0, 0)),
        ),
        compiler_params=pltpu.CompilerParams(**cp_kwargs),
    )(p, t, w)

    # Tiny final reduce over (num_chunks, 8, 128) partial sums.  f32
    # accumulation: each lane sums ~n/(1024*num_chunks) terms; fine for
    # realistic sizes.
    return jnp.sum(partials) / jnp.float32(n)


def weighted_mse(pred, target, weight, *, tile_rows=None, num_chunks=None,
                 vmem_limit_bytes=None, min_pallas_elems=65536):
    """Weighted MSE; tiny tensors use plain XLA (launch overhead dominates)."""
    defaults = _tpu_defaults()
    if tile_rows is None:
        tile_rows = defaults["tile_rows"]
    if num_chunks is None:
        num_chunks = defaults["num_chunks"]
    if vmem_limit_bytes is None:
        vmem_limit_bytes = defaults["vmem_limit_bytes"]

    if pred.size < max(min_pallas_elems, _SUBLANES * _LANES):
        d = pred.astype(jnp.float32) - target.astype(jnp.float32)
        return jnp.mean(weight.astype(jnp.float32) * d * d)
    return _weighted_mse_pallas(pred, target, weight, tile_rows=tile_rows,
                                num_chunks=num_chunks,
                                vmem_limit_bytes=vmem_limit_bytes)


def combined_loss(preds, targets, weights, **kwargs):
    """Pallas equivalent of CombinedLoss.forward with weighted-MSE criteria."""
    loss = jnp.float32(0.0)
    for key in preds:
        loss = loss + weighted_mse(preds[key], targets[key], weights[key],
                                   **kwargs)
    return loss


if __name__ == "__main__":
    key = jax.random.PRNGKey(0)
    ks = jax.random.split(key, 12)

    # Small shapes consistent with the module's per-key prediction dicts.
    shapes = {
        "scores": (2, 4, 16, 16),   # 2048 elements -> Pallas streaming path
        "offsets": (2, 8, 32),      # 512 elements  -> small-input XLA fallback
        "normals": (2, 5, 13),      # 130 elements  -> unaligned + fallback
    }
    preds, targets, weights = {}, {}, {}
    for j, (name, shp) in enumerate(shapes.items()):
        preds[name] = jax.random.normal(ks[3 * j + 0], shp, dtype=jnp.float32)
        targets[name] = jax.random.normal(ks[3 * j + 1], shp, dtype=jnp.float32)
        weights[name] = jax.nn.sigmoid(
            jax.random.normal(ks[3 * j + 2], shp, dtype=jnp.float32))

    # Force the Pallas path wherever the (8,128) layout allows it.
    out = jax.block_until_ready(
        combined_loss(preds, targets, weights, min_pallas_elems=0))

    ref = sum(
        jnp.mean(weights[k] * (preds[k] - targets[k]) ** 2) for k in preds)
    assert jnp.allclose(out, ref, rtol=1e-5, atol=1e-6), (out, ref)

    # Multi-block / multi-chunk / clamped-overflow paths (24 rows, tile 8,
    # 2 chunks -> one fully-masked duplicated overflow block).
    x = jax.random.normal(ks[9], (2, 12, 128), dtype=jnp.float32)
    y = jax.random.normal(ks[10], (2, 12, 128), dtype=jnp.float32)
    wgt = jax.nn.sigmoid(jax.random.normal(ks[11], (2, 12, 128),
                                           dtype=jnp.float32))
    small = jax.block_until_ready(
        _weighted_mse_pallas(x, y, wgt, tile_rows=8, num_chunks=2))
    small_ref = jnp.mean(wgt * (x - y) ** 2)
    assert jnp.allclose(small, small_ref, rtol=1e-5, atol=1e-6), (small, small_ref)

    # Unaligned size (n % 128 != 0): <=127-element zero pad plus the
    # row-masked partial last block.
    xu = jax.random.normal(ks[0], (3, 11, 100), dtype=jnp.float32)   # 3300 elems
    yu = jax.random.normal(ks[1], (3, 11, 100), dtype=jnp.float32)
    wu = jax.nn.sigmoid(jax.random.normal(ks[2], (3, 11, 100),
                                          dtype=jnp.float32))
    un = jax.block_until_ready(
        _weighted_mse_pallas(xu, yu, wu, tile_rows=16, num_chunks=1))
    un_ref = jnp.mean(wu * (xu - yu) ** 2)
    assert jnp.allclose(un, un_ref, rtol=1e-5, atol=1e-6), (un, un_ref)

    print("KERNEL_OK")
</pallas_src>

<mosaic_0001>
module attributes {stable_mosaic.version = 11 : i64} {
  func.func @_wmse_kernel(%arg0: i32, %arg1: i32, %arg2: memref<16x128xf32, #tpu.memory_space<vmem>>, %arg3: memref<16x128xf32, #tpu.memory_space<vmem>>, %arg4: memref<16x128xf32, #tpu.memory_space<vmem>>, %arg5: memref<1x8x128xf32, #tpu.memory_space<vmem>>) attributes {dimension_semantics = [#tpu.dimension_semantics<parallel>, #tpu.dimension_semantics<arbitrary>], iteration_bounds = array<i64: 1, 1>, scalar_prefetch = 0 : i64, scratch_operands = 0 : i64, tpu.core_type = #tpu.core_type<tc>, window_params = [{transform_indices = @transform_0, window_bounds = array<i64: 16, 128>}, {transform_indices = @transform_1, window_bounds = array<i64: 16, 128>}, {transform_indices = @transform_2, window_bounds = array<i64: 16, 128>}, {transform_indices = @transform_3, window_bounds = array<i64: 1, 8, 128>}]} {
    %c0_i32 = arith.constant 0 : i32
    %0 = arith.cmpi eq, %arg1, %c0_i32 : i32
    %1 = arith.extui %0 : i1 to i32
    %c0_i32_0 = arith.constant 0 : i32
    %2 = arith.cmpi ne, %1, %c0_i32_0 : i32
    scf.if %2 {
      %cst = arith.constant 0.000000e+00 : f32
      %20 = vector.broadcast %cst : f32 to vector<1x8x128xf32>
      %c0_12 = arith.constant 0 : index
      %c0_13 = arith.constant 0 : index
      %c0_14 = arith.constant 0 : index
      %21 = vector.load %arg5[%c0_12, %c0_13, %c0_14] : memref<1x8x128xf32, #tpu.memory_space<vmem>>, vector<1x8x128xf32>
      tpu.vector_store %arg5[%c0_12, %c0_13, %c0_14], %20 {strides = array<i32>} : memref<1x8x128xf32, #tpu.memory_space<vmem>>, vector<1x8x128xf32>,
    } else {
    }
    %c0 = arith.constant 0 : index
    %c0_1 = arith.constant 0 : index
    %3 = vector.load %arg2[%c0, %c0_1] : memref<16x128xf32, #tpu.memory_space<vmem>>, vector<16x128xf32>
    %c0_2 = arith.constant 0 : index
    %c0_3 = arith.constant 0 : index
    %4 = vector.load %arg3[%c0_2, %c0_3] : memref<16x128xf32, #tpu.memory_space<vmem>>, vector<16x128xf32>
    %c0_4 = arith.constant 0 : index
    %c0_5 = arith.constant 0 : index
    %5 = vector.load %arg4[%c0_4, %c0_5] : memref<16x128xf32, #tpu.memory_space<vmem>>, vector<16x128xf32>
    %6 = arith.subf %3, %4 : vector<16x128xf32>
    %7 = arith.mulf %5, %6 : vector<16x128xf32>
    %8 = arith.mulf %7, %6 : vector<16x128xf32>
    %c1_i32 = arith.constant 1 : i32
    %9 = arith.muli %arg0, %c1_i32 : i32
    %10 = arith.addi %9, %arg1 : i32
    %c16_i32 = arith.constant 16 : i32
    %11 = arith.muli %10, %c16_i32 : i32
    %c16_i32_6 = arith.constant 16 : i32
    %12 = arith.addi %11, %c16_i32_6 : i32
    %c16_i32_7 = arith.constant 16 : i32
    %13 = arith.cmpi sle, %12, %c16_i32_7 : i32
    %14 = arith.extui %13 : i1 to i32
    %c0_i32_8 = arith.constant 0 : i32
    %15 = arith.cmpi ne, %14, %c0_i32_8 : i32
    scf.if %15 {
      %c0_12 = arith.constant 0 : index
      %c0_13 = arith.constant 0 : index
      %c0_14 = arith.constant 0 : index
      %20 = vector.load %arg5[%c0_12, %c0_13, %c0_14] : memref<1x8x128xf32, #tpu.memory_space<vmem>>, vector<1x8x128xf32>
      %21 = vector.shape_cast %8 : vector<16x128xf32> to vector<2x8x128xf32>
      %cst = arith.constant dense<0.000000e+00> : vector<8x128xf32>
      %22 = vector.multi_reduction <add>, %21, %cst [0] : vector<2x8x128xf32> to vector<8x128xf32>
      %23 = vector.shape_cast %22 : vector<8x128xf32> to vector<1x8x128xf32>
      %24 = arith.addf %20, %23 : vector<1x8x128xf32>
      %c0_15 = arith.constant 0 : index
      %c0_16 = arith.constant 0 : index
      %c0_17 = arith.constant 0 : index
      %25 = vector.load %arg5[%c0_15, %c0_16, %c0_17] : memref<1x8x128xf32, #tpu.memory_space<vmem>>, vector<1x8x128xf32>
      tpu.vector_store %arg5[%c0_15, %c0_16, %c0_17], %24 {strides = array<i32>} : memref<1x8x128xf32, #tpu.memory_space<vmem>>, vector<1x8x128xf32>,
    } else {
    }
    %c16_i32_9 = arith.constant 16 : i32
    %16 = arith.addi %11, %c16_i32_9 : i32
    %c16_i32_10 = arith.constant 16 : i32
    %17 = arith.cmpi sgt, %16, %c16_i32_10 : i32
    %18 = arith.extui %17 : i1 to i32
    %c0_i32_11 = arith.constant 0 : i32
    %19 = arith.cmpi ne, %18, %c0_i32_11 : i32
    scf.if %19 {
      %20 = tpu.iota {dimensions = array<i32: 0>} : vector<16x128xi32>
      %21 = vector.broadcast %11 : i32 to vector<16x128xi32>
      %22 = arith.addi %20, %21 : vector<16x128xi32>
      %c16_i32_12 = arith.constant 16 : i32
      %23 = vector.broadcast %c16_i32_12 : i32 to vector<16x128xi32>
      %24 = arith.cmpi slt, %22, %23 : vector<16x128xi32>
      %cst = arith.constant 0.000000e+00 : f32
      %25 = vector.broadcast %cst : f32 to vector<16x128xf32>
      %26 = arith.select %24, %8, %25 : vector<16x128xi1>, vector<16x128xf32>
      %c0_13 = arith.constant 0 : index
      %c0_14 = arith.constant 0 : index
      %c0_15 = arith.constant 0 : index
      %27 = vector.load %arg5[%c0_13, %c0_14, %c0_15] : memref<1x8x128xf32, #tpu.memory_space<vmem>>, vector<1x8x128xf32>
      %28 = vector.shape_cast %26 : vector<16x128xf32> to vector<2x8x128xf32>
      %cst_16 = arith.constant dense<0.000000e+00> : vector<8x128xf32>
      %29 = vector.multi_reduction <add>, %28, %cst_16 [0] : vector<2x8x128xf32> to vector<8x128xf32>
      %30 = vector.shape_cast %29 : vector<8x128xf32> to vector<1x8x128xf32>
      %31 = arith.addf %27, %30 : vector<1x8x128xf32>
      %c0_17 = arith.constant 0 : index
      %c0_18 = arith.constant 0 : index
      %c0_19 = arith.constant 0 : index
      %32 = vector.load %arg5[%c0_17, %c0_18, %c0_19] : memref<1x8x128xf32, #tpu.memory_space<vmem>>, vector<1x8x128xf32>
      tpu.vector_store %arg5[%c0_17, %c0_18, %c0_19], %31 {strides = array<i32>} : memref<1x8x128xf32, #tpu.memory_space<vmem>>, vector<1x8x128xf32>,
    } else {
    }
    return
  }
  func.func @transform_0(%arg0: i32, %arg1: i32) -> (i32, i32) {
    %c1_i32 = arith.constant 1 : i32
    %0 = arith.muli %arg0, %c1_i32 : i32
    %1 = arith.addi %0, %arg1 : i32
    %c0_i32 = arith.constant 0 : i32
    %2 = arith.minsi %1, %c0_i32 : i32
    %c0_i32_0 = arith.constant 0 : i32
    %c0_i32_1 = arith.constant 0 : i32
    return %2, %c0_i32_0 : i32, i32
  }
  func.func @transform_1(%arg0: i32, %arg1: i32) -> (i32, i32) {
    %c1_i32 = arith.constant 1 : i32
    %0 = arith.muli %arg0, %c1_i32 : i32
    %1 = arith.addi %0, %arg1 : i32
    %c0_i32 = arith.constant 0 : i32
    %2 = arith.minsi %1, %c0_i32 : i32
    %c0_i32_0 = arith.constant 0 : i32
    %c0_i32_1 = arith.constant 0 : i32
    return %2, %c0_i32_0 : i32, i32
  }
  func.func @transform_2(%arg0: i32, %arg1: i32) -> (i32, i32) {
    %c1_i32 = arith.constant 1 : i32
    %0 = arith.muli %arg0, %c1_i32 : i32
    %1 = arith.addi %0, %arg1 : i32
    %c0_i32 = arith.constant 0 : i32
    %2 = arith.minsi %1, %c0_i32 : i32
    %c0_i32_0 = arith.constant 0 : i32
    %c0_i32_1 = arith.constant 0 : i32
    return %2, %c0_i32_0 : i32, i32
  }
  func.func @transform_3(%arg0: i32, %arg1: i32) -> (i32, i32, i32) {
    %c0_i32 = arith.constant 0 : i32
    %c0_i32_0 = arith.constant 0 : i32
    %c0_i32_1 = arith.constant 0 : i32
    return %arg0, %c0_i32, %c0_i32_0 : i32, i32, i32
  }
}

</mosaic_0001>

<bundles_post_ra>
// kernel: tpu_custom_call.1
= control target key start
LH: loop header
LB: loop body
LE: loop exit
PB: predicated region body
PF: predicated region fallthrough
CT: control target
= control target key end

     0   :  { %8 = vsyncpa [#allocation3], 0  ;;  %s285_s0 = inlined_call_operand.hbm [shape: f32[16,128], index: 0, kind: input, shape index: {}]   ;;  %s286_s1 = inlined_call_operand.hbm [shape: f32[16,128], index: 1, kind: input, shape index: {}]   ;;  %s287_s2 = inlined_call_operand.hbm [shape: f32[16,128], index: 2, kind: input, shape index: {}]   ;;  %s288_s3 = inlined_call_operand.hbm [shape: f32[1,8,128], index: 3, kind: output, shape index: {}]  }
   0x1   :  { %9 = vsyncpa [#allocation6], 0 }
   0x2   :  { %10 = vsyncpa [#allocation4], 0  ;;  %s247_s12 = smov [#allocation5]   ;;  %s248_s14 = smov [#allocation2]  }
   0x3   :  { %s40_s13 = sshll.u32 %s247_s12, 4  ;;  %s22_s15 = sshll.u32 %s248_s14, 4  ;;  %s41_s13 = int_to_ptr.vmem [resolvable:$true] %s40_s13  ;;  %s23_s15 = int_to_ptr.vmem [resolvable:$true] %s22_s15 }
   0x4   :  { %s169_s16 = scalar_lea.vmem %s41_s13, 256  ;;  %p174_p1 = scmp.lt.s32.totalorder %s41_s13, %s41_s13 }
   0x5   :  { %p170_p0 = scmp.ne.s32.totalorder %s41_s13, %s169_s16  ;;  %p175_p2 = scmp.lt.s32.totalorder %s169_s16, %s169_s16 }
   0x7   :  { %p176_p3 = por %p175_p2, %p174_p1 }
   0x9   :  { %p177_p4 = pnand %p176_p3, %p170_p0 }
   0xb   :  { %180 = shalt.err (!%p177_p4)
}
   0xc   :  { %s249_s17 = smov 128   ;;  %s250_s18 = smov 8  }
   0xd   :  { %46 = dma.hbm_to_vmem [thread:$0]  %s286_s1, 256, %s41_s13, [#allocation6], %s249_s17, %s249_s17, %s250_s18  }
   0xe   :  { %s189_s21 = scalar_lea.vmem %s23_s15, 256  ;;  %p194_p6 = scmp.lt.s32.totalorder %s23_s15, %s23_s15 }
   0xf   :  { %p190_p5 = scmp.ne.s32.totalorder %s23_s15, %s189_s21  ;;  %p195_p7 = scmp.lt.s32.totalorder %s189_s21, %s189_s21 }
  0x11   :  { %p196_p8 = por %p195_p7, %p194_p6 }
  0x13   :  { %p197_p9 = pnand %p196_p8, %p190_p5 }
  0x15   :  { %200 = shalt.err (!%p197_p9)
}
  0x16   :  { %28 = dma.hbm_to_vmem [thread:$0]  %s285_s0, 256, %s23_s15, [#allocation3], %s249_s17, %s249_s17, %s250_s18  }
  0x17   :  { %s251_s24 = smov [#allocation7]  }
  0x18   :  { %s58_s25 = sshll.u32 %s251_s24, 4  ;;  %s59_s25 = int_to_ptr.vmem [resolvable:$true] %s58_s25 }
  0x19   :  { %s209_s26 = scalar_lea.vmem %s59_s25, 256  ;;  %p214_p11 = scmp.lt.s32.totalorder %s59_s25, %s59_s25 }
  0x1a   :  { %p210_p10 = scmp.ne.s32.totalorder %s59_s25, %s209_s26  ;;  %p215_p12 = scmp.lt.s32.totalorder %s209_s26, %s209_s26 }
  0x1c   :  { %p216_p13 = por %p215_p12, %p214_p11 }
  0x1e   :  { %p217_p0 = pnand %p216_p13, %p210_p10 }
  0x20   :  { %220 = shalt.err (!%p217_p0)
}
  0x21   :  { %64 = dma.hbm_to_vmem [thread:$0]  %s287_s2, 256, %s59_s25, [#allocation6], %s249_s17, %s249_s17, %s250_s18  }
  0x22   :  { %241 = dma.done.wait [#allocation3], 256  }
  0x23   :  { %242 = vsyncadd [#allocation3], 4294967040 }
  0x24   :  { %243 = dma.done.wait [#allocation6], 512  }
  0x25   :  { %244 = vsyncadd [#allocation6], 4294966784  ;;  %v91_v0 = vld [vmem:[#allocation2] sm:$0xff]  ;;  %v92_v1 = vld [vmem:[#allocation2 + $0x8] sm:$0xff]  ;;  %s252_s0 = smov [#allocation8]  }
  0x26   :  { %v93_v2 = vld [vmem:[#allocation5] sm:$0xff]  ;;  %v94_v3 = vld [vmem:[#allocation5 + $0x8] sm:$0xff]  ;;  %v95_v4 = vld [vmem:[#allocation7] sm:$0xff]  ;;  %s138_s28 = sshll.u32 %s252_s0, 4  ;;  %s139_s28 = int_to_ptr.vmem [resolvable:$true] %s138_s28 }
  0x27   :  { %v96_v5 = vld [vmem:[#allocation7 + $0x8] sm:$0xff]  ;;  %v97_v6 = vsub.f32 %v91_v0, %v93_v2  ;;  %v98_v7 = vsub.f32 %v92_v1, %v94_v3  ;;  %s221_s2 = scalar_lea.vmem %s139_s28, 128  ;;  %p226_p2 = scmp.lt.s32.totalorder %s139_s28, %s139_s28 }
  0x28   :  { %p222_p1 = scmp.ne.s32.totalorder %s139_s28, %s221_s2  ;;  %p227_p3 = scmp.lt.s32.totalorder %s221_s2, %s221_s2 }
  0x29   :  { %v99_v8 = vmul.f32 %v97_v6, %v95_v4  ;;  %v100_v9 = vmul.f32 %v98_v7, %v96_v5 }
  0x2a   :  { %p228_p4 = por %p227_p3, %p226_p2 }
  0x2b   :  { %v101_v10 = vmul.f32 %v99_v8, %v97_v6  ;;  %v102_v11 = vmul.f32 %v100_v9, %v98_v7 }
  0x2c   :  { %p229_p5 = pnand %p228_p4, %p222_p1 }
  0x2d   :  { %v111_v12 = vadd.f32 %v102_v11, %v101_v10 }
  0x2f   :  { %113 = vst [vmem:[#allocation8] sm:$0xff] %v111_v12 }
  0x30   :  { %232 = shalt.err (!%p229_p5)
}
  0x31   :  { %141 = dma.vmem_to_hbm [thread:$0]  %s139_s28, 128, %s288_s3, [#allocation4]  }
  0x32   :  { %245 = dma.done.wait [#allocation4], 128  }
  0x33   :  { %246 = vsyncadd [#allocation4], 4294967168 }
  0x34   :  { %145 = vsyncpa [#allocation3], 1 }
  0x35   :  { %146 = vsyncpa [#allocation6], 1 }
  0x36   :  { %147 = vsyncpa [#allocation4], 1 }

</bundles_post_ra>
